<compile_context>
chip_gen: v6e
topology: v6e:2x2x1
jax: 0.10.0
libtpu: 0.0.40
codegen_flags: <defaults>
</compile_context>

<pallas_src>
import math
from functools import partial

import jax
import jax.numpy as jnp
import numpy as np
from jax.experimental import pallas as pl
from jax.experimental.pallas import tpu as pltpu

EPS = 1e-5
INV_SQRT2 = 1.0 / math.sqrt(2.0)
S1_TM_CAP = 4096                      # stage-1 row-tile cap (tiny K -> go big)
VMEM_LIMIT = 48 * 1024 * 1024


def _round_up(x, m):
    return (x + m - 1) // m * m


def _gelu(y):
    # nn.GELU() default: exact erf-based GELU (f32 math).
    return 0.5 * y * (1.0 + jax.lax.erf(y * INV_SQRT2))


def _pick_row_tile(m, cap):
    """Row tile for an (M, K) operand: prefer a divisor of M (no pad/slice)."""
    if m <= cap:
        return m, m
    d = cap - cap % 8
    while d >= 8:
        if m % d == 0:
            return d, m
        d -= 8
    tm = cap
    return tm, _round_up(m, tm)


# ---------------------------------------------------------------------------
# Stage-1 kernels (im2col matmul formulation, tiny K).
# ---------------------------------------------------------------------------
def _s1_stats_kernel(p_ref, w_ref, sum_ref, ssq_ref):
    y = jnp.dot(p_ref[...], w_ref[...], preferred_element_type=jnp.float32)
    sum_ref[0] = jnp.sum(y, axis=0, keepdims=True)
    ssq_ref[0] = jnp.sum(y * y, axis=0, keepdims=True)


def _s1_apply_kernel(p_ref, w_ref, scale_ref, shift_ref, h_ref):
    y = jnp.dot(p_ref[...], w_ref[...], preferred_element_type=jnp.float32)
    y = y * scale_ref[...] + shift_ref[...]
    h_ref[...] = _gelu(y).astype(h_ref.dtype)


def _stage1(x_nhwc, w_oihw, gamma, beta):
    """3x3/s2/p1 conv -> BatchNorm(batch stats) -> GELU; returns bf16 NHWC."""
    N, H, W, Cin = x_nhwc.shape
    Cout = w_oihw.shape[0]
    k, s, p = 3, 2, 1
    x = x_nhwc.astype(jnp.bfloat16)

    # im2col in glue (bf16); K = 9*Cin is tiny so the duplication is cheap.
    xp = jnp.pad(x, ((0, 0), (p, p), (p, p), (0, 0)))
    Ho = (H + 2 * p - k) // s + 1
    Wo = (W + 2 * p - k) // s + 1
    cols = [xp[:, di:di + s * Ho:s, dj:dj + s * Wo:s, :]
            for di in range(k) for dj in range(k)]
    patches = jnp.stack(cols, axis=3).reshape(N * Ho * Wo, k * k * Cin)
    M, K = patches.shape

    # Weight matrix matching im2col feature order (kh, kw, Cin).
    w_mat = jnp.transpose(w_oihw, (2, 3, 1, 0)).reshape(K, Cout).astype(jnp.bfloat16)
    g = gamma.astype(jnp.float32).reshape(1, Cout)
    b = beta.astype(jnp.float32).reshape(1, Cout)

    TM, Mp = _pick_row_tile(M, S1_TM_CAP)
    if Mp != M:
        patches = jnp.pad(patches, ((0, Mp - M), (0, 0)))   # zero rows: stats stay exact
    n_tiles = Mp // TM
    grid = (n_tiles,)

    patch_spec = pl.BlockSpec((TM, K), lambda i: (i, 0))
    w_spec = pl.BlockSpec((K, Cout), lambda i: (0, 0))
    vec_spec = pl.BlockSpec((1, Cout), lambda i: (0, 0))
    stat_spec = pl.BlockSpec((1, 1, Cout), lambda i: (i, 0, 0))
    h_spec = pl.BlockSpec((TM, Cout), lambda i: (i, 0))

    # Pass 1: per-tile partial BN statistics (fully parallel grid).
    psum, pssq = pl.pallas_call(
        _s1_stats_kernel,
        grid=grid,
        in_specs=[patch_spec, w_spec],
        out_specs=[stat_spec, stat_spec],
        out_shape=[jax.ShapeDtypeStruct((n_tiles, 1, Cout), jnp.float32)] * 2,
        compiler_params=pltpu.CompilerParams(
            dimension_semantics=("parallel",),
            vmem_limit_bytes=VMEM_LIMIT),
        cost_estimate=pl.CostEstimate(
            flops=int(2 * Mp * K * Cout + 4 * Mp * Cout),
            transcendentals=0,
            bytes_accessed=int(Mp * K * 2 + K * Cout * 2 + 2 * n_tiles * Cout * 4)),
    )(patches, w_mat)

    # Fold BN (conv bias dropped: cancelled exactly by batch-mean subtraction).
    inv_m = 1.0 / float(M)
    mean = jnp.sum(psum, axis=0) * inv_m                    # (1, Cout)
    var = jnp.maximum(jnp.sum(pssq, axis=0) * inv_m - mean * mean, 0.0)
    scale = g * jax.lax.rsqrt(var + EPS)
    shift = b - mean * scale

    # Pass 2: recompute the tiny-K matmul, apply BN + GELU, write bf16 h.
    h = pl.pallas_call(
        _s1_apply_kernel,
        grid=grid,
        in_specs=[patch_spec, w_spec, vec_spec, vec_spec],
        out_specs=h_spec,
        out_shape=jax.ShapeDtypeStruct((Mp, Cout), jnp.bfloat16),
        compiler_params=pltpu.CompilerParams(
            dimension_semantics=("parallel",),
            vmem_limit_bytes=VMEM_LIMIT),
        cost_estimate=pl.CostEstimate(
            flops=int(2 * Mp * K * Cout + 2 * Mp * Cout),
            transcendentals=int(Mp * Cout),
            bytes_accessed=int(Mp * K * 2 + K * Cout * 2 + Mp * Cout * 2)),
    )(patches, w_mat, scale, shift)

    if Mp != M:
        h = h[:M]
    return h.reshape(N, Ho, Wo, Cout)


# ---------------------------------------------------------------------------
# Stage-2 kernels: direct (im2col-free) 9-tap conv over phase-split input.
# ---------------------------------------------------------------------------
def _s2_conv_kernel(Wh, Wo2, hsd_ref, w_ref, y_ref, sum_ref, ssq_ref):
    # hsd_ref: (1, 4, F, C1) bf16  -- phase-split, spatially flattened, padded.
    # w_ref:   (9, C1, C2)  bf16
    # y_ref:   (1, L, C2)   bf16   -- L = Ho2*Wh; the (t % Wh == Wo2) rows are junk.
    L = y_ref.shape[1]
    C2 = y_ref.shape[2]
    acc = jnp.zeros((L, C2), jnp.float32)
    for di in range(3):
        for dj in range(3):
            p = (di % 2) * 2 + (dj % 2)
            start = (di // 2) * Wh + (dj // 2)
            lhs = hsd_ref[0, p, start:start + L, :]          # contiguous slice
            acc = acc + jnp.dot(lhs, w_ref[3 * di + dj],
                                preferred_element_type=jnp.float32)
    y_ref[0] = acc.astype(y_ref.dtype)

    # Per-channel batch statistics over the valid output columns only.
    col = jax.lax.broadcasted_iota(jnp.int32, (L, 1), 0) % Wh
    msk = (col < Wo2).astype(jnp.float32)
    ym = acc * msk
    sum_ref[0] = jnp.sum(ym, axis=0, keepdims=True)
    ssq_ref[0] = jnp.sum(ym * ym, axis=0, keepdims=True)


def _s2_apply_kernel(Wo2, y_ref, scale_ref, shift_ref, o_ref):
    # y_ref: (1, Ho2, Wh, C2) bf16 ; o_ref: (1, Ho2, Wo2, C2) f32
    y = y_ref[0, :, :Wo2, :].astype(jnp.float32)
    y = y * scale_ref[...] + shift_ref[...]
    o_ref[0] = y.astype(o_ref.dtype)


def _stage2(h_nhwc, w_oihw, gamma, beta, out_dtype=jnp.float32):
    """3x3/s2/p1 conv -> BatchNorm(batch stats); direct conv, no im2col in HBM."""
    N, Ho1, Wo1, C1 = h_nhwc.shape
    C2 = w_oihw.shape[0]
    Ho2 = (Ho1 - 1) // 2 + 1
    Wo2 = (Wo1 - 1) // 2 + 1
    Hh = Ho2 + 2                      # halo + spare row pair so tap runs stay in range
    Wh = Wo2 + 1
    Hp, Wp = 2 * Hh, 2 * Wh
    F = Hh * Wh
    L = Ho2 * Wh                      # flattened output rows incl. 1 junk column/row

    # Pad + space-to-depth (phase split): stride-2 taps become contiguous
    # in-kernel slices, so the 2.25x im2col duplication never touches HBM.
    hp = jnp.pad(h_nhwc, ((0, 0), (1, Hp - Ho1 - 1), (1, Wp - Wo1 - 1), (0, 0)))
    hsd = hp.reshape(N, Hh, 2, Wh, 2, C1).transpose(0, 2, 4, 1, 3, 5)
    hsd = hsd.reshape(N, 4, F, C1)

    w_t = jnp.transpose(w_oihw, (2, 3, 1, 0)).reshape(9, C1, C2).astype(jnp.bfloat16)
    g = gamma.astype(jnp.float32).reshape(1, C2)
    b = beta.astype(jnp.float32).reshape(1, C2)

    grid = (N,)
    hsd_spec = pl.BlockSpec((1, 4, F, C1), lambda n: (n, 0, 0, 0))
    w_spec = pl.BlockSpec((9, C1, C2), lambda n: (0, 0, 0))
    y_spec = pl.BlockSpec((1, L, C2), lambda n: (n, 0, 0))
    stat_spec = pl.BlockSpec((1, 1, C2), lambda n: (n, 0, 0))

    # Pass 1: direct 9-tap conv, bf16 y writeback, per-image partial stats.
    y, psum, pssq = pl.pallas_call(
        partial(_s2_conv_kernel, Wh, Wo2),
        grid=grid,
        in_specs=[hsd_spec, w_spec],
        out_specs=[y_spec, stat_spec, stat_spec],
        out_shape=[jax.ShapeDtypeStruct((N, L, C2), jnp.bfloat16),
                   jax.ShapeDtypeStruct((N, 1, C2), jnp.float32),
                   jax.ShapeDtypeStruct((N, 1, C2), jnp.float32)],
        compiler_params=pltpu.CompilerParams(
            dimension_semantics=("parallel",),
            vmem_limit_bytes=VMEM_LIMIT),
        cost_estimate=pl.CostEstimate(
            flops=int(N * (2 * 9 * L * C1 * C2 + 6 * L * C2)),
            transcendentals=0,
            bytes_accessed=int(N * (4 * F * C1 * 2 + L * C2 * 2 + 2 * C2 * 4)
                               + 9 * C1 * C2 * 2)),
    )(hsd, w_t)

    m_true = N * Ho2 * Wo2
    inv_m = 1.0 / float(m_true)
    mean = jnp.sum(psum, axis=0) * inv_m                    # (1, C2)
    var = jnp.maximum(jnp.sum(pssq, axis=0) * inv_m - mean * mean, 0.0)
    scale = g * jax.lax.rsqrt(var + EPS)
    shift = b - mean * scale

    # Pass 2: reload bf16 y, normalize, write the final dense NHWC output.
    y4 = y.reshape(N, Ho2, Wh, C2)                          # contiguous -> free reshape
    out = pl.pallas_call(
        partial(_s2_apply_kernel, Wo2),
        grid=grid,
        in_specs=[pl.BlockSpec((1, Ho2, Wh, C2), lambda n: (n, 0, 0, 0)),
                  pl.BlockSpec((1, C2), lambda n: (0, 0)),
                  pl.BlockSpec((1, C2), lambda n: (0, 0))],
        out_specs=pl.BlockSpec((1, Ho2, Wo2, C2), lambda n: (n, 0, 0, 0)),
        out_shape=jax.ShapeDtypeStruct((N, Ho2, Wo2, C2), out_dtype),
        compiler_params=pltpu.CompilerParams(
            dimension_semantics=("parallel",),
            vmem_limit_bytes=VMEM_LIMIT),
        cost_estimate=pl.CostEstimate(
            flops=int(2 * N * Ho2 * Wo2 * C2),
            transcendentals=0,
            bytes_accessed=int(N * Ho2 * (Wh * C2 * 2 + Wo2 * C2 * 4))),
    )(y4, scale, shift)
    return out


def xcit_first_patch_embed(x_nchw, params):
    """Forward of XCiTFirstPatchEmbed. Input NCHW, output NHWC (== permute(0,2,3,1))."""
    x = jnp.transpose(x_nchw, (0, 2, 3, 1))  # -> NHWC
    # Conv biases b1/b2 are intentionally NOT applied: a per-channel bias before
    # training-mode BatchNorm is cancelled exactly by the mean subtraction.
    h = _stage1(x, params["w1"], params["g1"], params["be1"])
    out = _stage2(h, params["w2"], params["g2"], params["be2"])
    return out


# ---------------------------------------------------------------------------
# Pure-JAX reference (mirrors the PyTorch module in training mode).
# ---------------------------------------------------------------------------
def _reference(x_nchw, params):
    def conv(x, w, b):
        y = jax.lax.conv_general_dilated(
            x, w, window_strides=(2, 2), padding=((1, 1), (1, 1)),
            dimension_numbers=("NCHW", "OIHW", "NCHW"))
        return y + b[None, :, None, None]

    def bn(x, g, bta):
        m = jnp.mean(x, axis=(0, 2, 3), keepdims=True)
        v = jnp.mean(jnp.square(x - m), axis=(0, 2, 3), keepdims=True)
        return (x - m) * jax.lax.rsqrt(v + EPS) * g[None, :, None, None] + bta[None, :, None, None]

    y = conv(x_nchw, params["w1"], params["b1"])
    y = bn(y, params["g1"], params["be1"])
    y = 0.5 * y * (1.0 + jax.lax.erf(y * INV_SQRT2))
    y = conv(y, params["w2"], params["b2"])
    y = bn(y, params["g2"], params["be2"])
    return jnp.transpose(y, (0, 2, 3, 1))


def make_params(key, in_chans, embed_dim, kernel_size=3):
    mid = embed_dim // 2
    k1, k2, k3, k4 = jax.random.split(key, 4)

    def conv_init(kw, kb, cout, cin):
        fan_in = cin * kernel_size * kernel_size
        bound = 1.0 / math.sqrt(fan_in)
        w = jax.random.uniform(kw, (cout, cin, kernel_size, kernel_size),
                               jnp.float32, -bound, bound)
        b = jax.random.uniform(kb, (cout,), jnp.float32, -bound, bound)
        return w, b

    w1, b1 = conv_init(k1, k2, mid, in_chans)
    w2, b2 = conv_init(k3, k4, embed_dim, mid)
    return {
        "w1": w1, "b1": b1,
        "g1": jnp.ones((mid,), jnp.float32), "be1": jnp.zeros((mid,), jnp.float32),
        "w2": w2, "b2": b2,
        "g2": jnp.ones((embed_dim,), jnp.float32), "be2": jnp.zeros((embed_dim,), jnp.float32),
    }


if __name__ == "__main__":
    N, C, H, W = 2, 4, 16, 16
    embed_dim = 32

    key = jax.random.PRNGKey(0)
    kx, kp = jax.random.split(key)
    x = jax.random.normal(kx, (N, C, H, W), jnp.float32)
    params = make_params(kp, C, embed_dim)

    out = jax.block_until_ready(xcit_first_patch_embed(x, params))
    assert out.shape == (N, H // 4, W // 4, embed_dim), out.shape

    ref = jax.block_until_ready(_reference(x, params))
    # Loose tolerance: bf16 MXU operands / bf16 intermediates vs f32 XLA reference.
    np.testing.assert_allclose(np.asarray(out), np.asarray(ref), rtol=5e-2, atol=5e-2)

    print("KERNEL_OK")
</pallas_src>

<mosaic_0001>
module attributes {stable_mosaic.version = 11 : i64} {
  func.func @_s1_stats_kernel(%arg0: i32, %arg1: memref<128x36xbf16, #tpu.memory_space<vmem>>, %arg2: memref<36x16xbf16, #tpu.memory_space<vmem>>, %arg3: memref<1x1x16xf32, #tpu.memory_space<vmem>>, %arg4: memref<1x1x16xf32, #tpu.memory_space<vmem>>) attributes {dimension_semantics = [#tpu.dimension_semantics<parallel>], iteration_bounds = array<i64: 1>, scalar_prefetch = 0 : i64, scratch_operands = 0 : i64, tpu.core_type = #tpu.core_type<tc>, window_params = [{transform_indices = @transform_0, window_bounds = array<i64: 128, 36>}, {pipeline_mode = #tpu.pipeline_mode<synchronous>, transform_indices = @transform_1, window_bounds = array<i64: 36, 16>}, {transform_indices = @transform_2, window_bounds = array<i64: 1, 1, 16>}, {transform_indices = @transform_3, window_bounds = array<i64: 1, 1, 16>}]} {
    %c0 = arith.constant 0 : index
    %c0_0 = arith.constant 0 : index
    %0 = vector.load %arg1[%c0, %c0_0] : memref<128x36xbf16, #tpu.memory_space<vmem>>, vector<128x36xbf16>
    %c0_1 = arith.constant 0 : index
    %c0_2 = arith.constant 0 : index
    %1 = vector.load %arg2[%c0_1, %c0_2] : memref<36x16xbf16, #tpu.memory_space<vmem>>, vector<36x16xbf16>
    %cst = arith.constant dense<0.000000e+00> : vector<128x16xf32>
    %2 = tpu.matmul %0, %1, %cst {dimension_numbers = #tpu.dot_dimension_numbers<[1], [0], [0], [1], [0, 0, 1, 1], [], []>} : vector<128x36xbf16>, vector<36x16xbf16>, vector<128x16xf32> -> vector<128x16xf32>
    %cst_3 = arith.constant dense<0.000000e+00> : vector<16xf32>
    %3 = vector.multi_reduction <add>, %2, %cst_3 [0] : vector<128x16xf32> to vector<16xf32>
    %4 = vector.shape_cast %3 : vector<16xf32> to vector<1x16xf32>
    %c0_4 = arith.constant 0 : index
    %c0_5 = arith.constant 0 : index
    %c0_6 = arith.constant 0 : index
    %5 = vector.load %arg3[%c0_4, %c0_5, %c0_6] : memref<1x1x16xf32, #tpu.memory_space<vmem>>, vector<1x1x16xf32>
    %6 = vector.shape_cast %5 : vector<1x1x16xf32> to vector<1x16xf32>
    %7 = vector.shape_cast %4 : vector<1x16xf32> to vector<1x1x16xf32>
    tpu.vector_store %arg3[%c0_4, %c0_5, %c0_6], %7 {strides = array<i32>} : memref<1x1x16xf32, #tpu.memory_space<vmem>>, vector<1x1x16xf32>,
    %8 = arith.mulf %2, %2 : vector<128x16xf32>
    %cst_7 = arith.constant dense<0.000000e+00> : vector<16xf32>
    %9 = vector.multi_reduction <add>, %8, %cst_7 [0] : vector<128x16xf32> to vector<16xf32>
    %10 = vector.shape_cast %9 : vector<16xf32> to vector<1x16xf32>
    %c0_8 = arith.constant 0 : index
    %c0_9 = arith.constant 0 : index
    %c0_10 = arith.constant 0 : index
    %11 = vector.load %arg4[%c0_8, %c0_9, %c0_10] : memref<1x1x16xf32, #tpu.memory_space<vmem>>, vector<1x1x16xf32>
    %12 = vector.shape_cast %11 : vector<1x1x16xf32> to vector<1x16xf32>
    %13 = vector.shape_cast %10 : vector<1x16xf32> to vector<1x1x16xf32>
    tpu.vector_store %arg4[%c0_8, %c0_9, %c0_10], %13 {strides = array<i32>} : memref<1x1x16xf32, #tpu.memory_space<vmem>>, vector<1x1x16xf32>,
    return
  }
  func.func @transform_0(%arg0: i32) -> (i32, i32) {
    %c0_i32 = arith.constant 0 : i32
    %c0_i32_0 = arith.constant 0 : i32
    return %arg0, %c0_i32 : i32, i32
  }
  func.func @transform_1(%arg0: i32) -> (i32, i32) {
    %c0_i32 = arith.constant 0 : i32
    %c0_i32_0 = arith.constant 0 : i32
    %c0_i32_1 = arith.constant 0 : i32
    return %c0_i32, %c0_i32_0 : i32, i32
  }
  func.func @transform_2(%arg0: i32) -> (i32, i32, i32) {
    %c0_i32 = arith.constant 0 : i32
    %c0_i32_0 = arith.constant 0 : i32
    %c0_i32_1 = arith.constant 0 : i32
    return %arg0, %c0_i32, %c0_i32_0 : i32, i32, i32
  }
  func.func @transform_3(%arg0: i32) -> (i32, i32, i32) {
    %c0_i32 = arith.constant 0 : i32
    %c0_i32_0 = arith.constant 0 : i32
    %c0_i32_1 = arith.constant 0 : i32
    return %arg0, %c0_i32, %c0_i32_0 : i32, i32, i32
  }
}

</mosaic_0001>

<bundles_post_ra>
// kernel: tpu_custom_call.1
= control target key start
LH: loop header
LB: loop body
LE: loop exit
PB: predicated region body
PF: predicated region fallthrough
CT: control target
= control target key end

     0   :  { %9 = vsyncpa [#allocation3], 0  ;;  %vm117_vm0 = vcmask 1041408   ;;  %vm92_vm1 = vcmask 293888   ;;  %s560_s0 = inlined_call_operand.vmem [shape: bf16[128,36], index: 0, kind: input, shape index: {}]   ;;  %s561_s1 = inlined_call_operand.vmem [shape: bf16[36,16], index: 1, kind: input, shape index: {}]   ;;  %s562_s2 = inlined_call_operand.hbm [shape: f32[1,1,16], index: 2, kind: output, shape index: {0}]   ;;  %s563_s3 = inlined_call_operand.hbm [shape: f32[1,1,16], index: 3, kind: output, shape index: {1}]  }
   0x1   :  { %v402_v0 = vld [vmem:[%s561_s1 + $0x10] ss:$0 sps:$4 sm:$0x33]   ;;  %v403_v1 = vld [vmem:[%s561_s1 + $0x8] sm:$0xff]   ;;  %v405_v3 = vld [vmem:[%s560_s0] sm:$0xff]  }
   0x2   :  { %398 = vmatprep.subr.msk.bf16.mxu0 %vm117_vm0, %v402_v0  ;;  %v119_v2 = vsel %vm117_vm0, %v402_v0, 0  ;;  %399 = vmatprep.subr.msk.bf16.mxu1 %vm117_vm0, %v402_v0  ;;  %v404_v4 = vld [vmem:[%s561_s1] sm:$0xff]   ;;  %v406_v6 = vld [vmem:[%s560_s0 + $0x8] sm:$0xff]   ;;  %v407_v8 = vld [vmem:[%s560_s0 + $0x10] sm:$0xff]  }
   0x3   :  { %371 = vmatpush3.bf16.msra.mxu0 %v119_v2  ;;  %395 = vmatpush3.bf16.msra.mxu1 %v119_v2  ;;  %v409_v5 = vld [vmem:[%s560_s0 + $0x20] sm:$0xff]   ;;  %v410_v7 = vld [vmem:[%s560_s0 + $0x28] sm:$0xff]   ;;  %v411_v9 = vld [vmem:[%s560_s0 + $0x30] sm:$0xff]  }
   0x4   :  { %372 = vmatprep.subr.bf16.mxu0 %v403_v1  ;;  %393 = vmatprep.subr.bf16.mxu1 %v403_v1 }
   0x5   :  { %376 = vmatprep.mubr.msk.bf16.mxu0 %vm92_vm1, %v405_v3  ;;  %384 = vmatprep.mubr.msk.bf16.mxu1 %vm92_vm1, %v409_v5 }
   0x7   :  { %373 = vmatpush3.bf16.msra.mxu0 %v403_v1  ;;  %396 = vmatpush3.bf16.msra.mxu1 %v403_v1 }
   0x8   :  { %374 = vmatprep.subr.bf16.mxu0 %v404_v4  ;;  %394 = vmatprep.subr.bf16.mxu1 %v404_v4 }
   0xb   :  { %375 = vmatpush3.bf16.msra.mxu0 %v404_v4  ;;  %397 = vmatpush3.bf16.msra.mxu1 %v404_v4 }
   0xc   :  { %10 = vsyncpa [#allocation5], 0  ;;  %v408_v10 = vld [vmem:[%s560_s0 + $0x18] sm:$0xff]   ;;  %vm218_vm2 = vcmask 130048   ;;  %vm256_vm3 = vcmask 122880   ;;  %s458_s7 = smov [#allocation4]  }
   0xd   :  { %v412_v11 = vld [vmem:[%s560_s0 + $0x38] sm:$0xff]   ;;  %s457_s0 = smov [#allocation2]   ;;  %s328_s8 = sshll.u32 %s458_s7, 4  ;;  %s329_s8 = int_to_ptr.vmem [resolvable:$true] %s328_s8 }
   0xe   :  { %377 = vmatmul.mubr.msk.bf16.vlgmr.msra.gmra.mxu0 %vm92_vm1, %v406_v6  ;;  %385 = vmatmul.mubr.msk.bf16.vlgmr.msra.gmra.mxu1 %vm92_vm1, %v410_v7  ;;  %s318_s6 = sshll.u32 %s457_s0, 4  ;;  %s319_s6 = int_to_ptr.vmem [resolvable:$true] %s318_s6 }
   0xf   :  { %380 = vmatprep.mubr.msk.bf16.mxu0 %vm92_vm1, %v407_v8  ;;  %388 = vmatprep.mubr.msk.bf16.mxu1 %vm92_vm1, %v411_v9  ;;  %s413_s9 = scalar_lea.vmem %s319_s6, 16  ;;  %s417_s10 = scalar_lea.vmem %s319_s6, 32 }
  0x10   :  { %p414_p0 = scmp.ne.s32.totalorder %s319_s6, %s413_s9  ;;  %p418_p1 = scmp.lt.s32.totalorder %s319_s6, %s319_s6 }
  0x11   :  { %p419_p2 = scmp.lt.s32.totalorder %s417_s10, %s413_s9 }
  0x13   :  { %p420_p3 = por %p419_p2, %p418_p1 }
  0x15   :  { %p421_p4 = pnand %p420_p3, %p414_p0 }
  0x16   :  { %381 = vmatmul.mubr.msk.bf16.gmra.mxu0 %vm92_vm1, %v408_v10  ;;  %389 = vmatmul.mubr.msk.bf16.gmra.mxu1 %vm92_vm1, %v412_v11 }
  0xce   :  { %v378_v12 = vpop.f32.mrf.mxu0  ;;  %v386_v13 = vpop.f32.mrf.mxu1 }
  0xcf   :  { %v260_v20 = vmul.f32 %v378_v12, %v378_v12  ;;  %v222_v26 = vsel %vm218_vm2, %v378_v12, 0.0  ;;  %v268_v5 = vmul.f32 %v386_v13, %v386_v13  ;;  %v238_v10 = vsel %vm218_vm2, %v386_v13, 0.0 }
  0xd0   :  { %v155_v14 = vpop.f32.mrf.mxu0  ;;  %v187_v15 = vpop.f32.mrf.mxu1 }
  0xd1   :  { %v258_v17 = vmul.f32 %v155_v14, %v155_v14  ;;  %v219_v21 = vsel %vm218_vm2, %v155_v14, 0.0  ;;  %v277_v34 = vsel %vm218_vm2, %v260_v20, 0.0  ;;  %v266_v60 = vmul.f32 %v187_v15, %v187_v15 }
  0xd2   :  { %v379_v16 = vpop.f32.mrf.mxu0  ;;  %v387_v19 = vpop.f32.mrf.mxu1  ;;  %v234_v0 = vsel %vm218_vm2, %v187_v15, 0.0  ;;  %v293_v15 = vsel %vm218_vm2, %v268_v5, 0.0 }
  0xd3   :  { %v274_v27 = vsel %vm218_vm2, %v258_v17, 0.0  ;;  %v261_v28 = vmul.f32 %v379_v16, %v379_v16  ;;  %v224_v35 = vsel %vm218_vm2, %v379_v16, 0.0  ;;  %v289_v6 = vsel %vm218_vm2, %v266_v60, 0.0 }
  0xd4   :  { %v158_v18 = vpop.f32.mrf.mxu0  ;;  %v190_v33 = vpop.f32.mrf.mxu1  ;;  %v269_v11 = vmul.f32 %v387_v19, %v387_v19 }
  0xd5   :  { %v220_v22 = vsel %vm218_vm2, %v158_v18, 0.0  ;;  %v259_v23 = vmul.f32 %v158_v18, %v158_v18  ;;  %v279_v40 = vsel %vm218_vm2, %v261_v28, 0.0  ;;  %v267_v1 = vmul.f32 %v190_v33, %v190_v33 }
  0xd6   :  { %v221_v24 = vadd.f32 %v220_v22, %v219_v21  ;;  %v382_v25 = vpop.f32.mrf.mxu0  ;;  %v390_v45 = vpop.f32.mrf.mxu1  ;;  %v236_v7 = vsel %vm218_vm2, %v190_v33, 0.0  ;;  %v240_v18 = vsel %vm218_vm2, %v387_v19, 0.0 }
  0xd7   :  { %v275_v29 = vsel %vm218_vm2, %v259_v23, 0.0  ;;  %v264_v46 = vmul.f32 %v382_v25, %v382_v25  ;;  %v230_v52 = vsel %vm218_vm2, %v382_v25, 0.0  ;;  %v291_v12 = vsel %vm218_vm2, %v267_v1, 0.0 }
  0xd8   :  { %v223_v30 = vadd.f32 %v222_v26, %v221_v24  ;;  %v276_v31 = vadd.f32 %v275_v29, %v274_v27  ;;  %v171_v32 = vpop.f32.mrf.mxu0  ;;  %v203_v57 = vpop.f32.mrf.mxu1  ;;  %v295_v23 = vsel %vm218_vm2, %v269_v11, 0.0  ;;  %v272_v27 = vmul.f32 %v390_v45, %v390_v45 }
  0xd9   :  { %v262_v36 = vmul.f32 %v171_v32, %v171_v32  ;;  %v226_v41 = vsel %vm218_vm2, %v171_v32, 0.0  ;;  %v285_v58 = vsel %vm218_vm2, %v264_v46, 0.0  ;;  %v270_v20 = vmul.f32 %v203_v57, %v203_v57 }
  0xda   :  { %v278_v37 = vadd.f32 %v277_v34, %v276_v31  ;;  %v225_v38 = vadd.f32 %v224_v35, %v223_v30  ;;  %v383_v39 = vpop.f32.mrf.mxu0  ;;  %v391_v4 = vpop.f32.mrf.mxu1  ;;  %v242_v24 = vsel %vm218_vm2, %v203_v57, 0.0  ;;  %v246_v32 = vsel %vm218_vm2, %v390_v45, 0.0 }
  0xdb   :  { %v281_v47 = vsel %vm218_vm2, %v262_v36, 0.0  ;;  %v265_v53 = vmul.f32 %v383_v39, %v383_v39  ;;  %v232_v59 = vsel %vm218_vm2, %v383_v39, 0.0  ;;  %v297_v28 = vsel %vm218_vm2, %v270_v20, 0.0 }
  0xdc   :  { %v227_v42 = vadd.f32 %v226_v41, %v225_v38  ;;  %v280_v43 = vadd.f32 %v279_v40, %v278_v37  ;;  %v174_v44 = vpop.f32.mrf.mxu0  ;;  %v206_v17 = vpop.f32.mrf.mxu1  ;;  %v273_v19 = vmul.f32 %v391_v4, %v391_v4  ;;  %v301_v36 = vsel %vm218_vm2, %v272_v27, 0.0 }
  0xdd   :  { %v228_v48 = vsel %vm218_vm2, %v174_v44, 0.0  ;;  %v263_v49 = vmul.f32 %v174_v44, %v174_v44  ;;  %v287_v63 = vsel %vm218_vm2, %v265_v53, 0.0  ;;  %v271_v25 = vmul.f32 %v206_v17, %v206_v17 }
  0xde   :  { %v282_v50 = vadd.f32 %v281_v47, %v280_v43  ;;  %v229_v51 = vadd.f32 %v228_v48, %v227_v42  ;;  %v244_v29 = vsel %vm218_vm2, %v206_v17, 0.0  ;;  %v248_v37 = vsel %vm218_vm2, %v391_v4, 0.0 }
  0xdf   :  { %v283_v54 = vsel %vm218_vm2, %v263_v49, 0.0  ;;  %v299_v33 = vsel %vm218_vm2, %v271_v25, 0.0  ;;  %v303_v40 = vsel %vm218_vm2, %v273_v19, 0.0 }
  0xe0   :  { %v231_v55 = vadd.f32 %v230_v52, %v229_v51  ;;  %v284_v56 = vadd.f32 %v283_v54, %v282_v50 }
  0xe2   :  { %v233_v61 = vadd.f32 %v232_v59, %v231_v55  ;;  %v286_v62 = vadd.f32 %v285_v58, %v284_v56 }
  0xe4   :  { %v288_v2 = vadd.f32 %v287_v63, %v286_v62  ;;  %v235_v3 = vadd.f32 %v234_v0, %v233_v61 }
  0xe6   :  { %v237_v8 = vadd.f32 %v236_v7, %v235_v3  ;;  %v290_v9 = vadd.f32 %v289_v6, %v288_v2 }
  0xe8   :  { %v239_v14 = vadd.f32 %v238_v10, %v237_v8  ;;  %v292_v16 = vadd.f32 %v291_v12, %v290_v9 }
  0xea   :  { %v294_v21 = vadd.f32 %v293_v15, %v292_v16  ;;  %v241_v22 = vadd.f32 %v240_v18, %v239_v14 }
  0xec   :  { %v243_v26 = vadd.f32 %v242_v24, %v241_v22  ;;  %v296_v13 = vadd.f32 %v295_v23, %v294_v21 }
  0xee   :  { %v298_v30 = vadd.f32 %v297_v28, %v296_v13  ;;  %v245_v31 = vadd.f32 %v244_v29, %v243_v26 }
  0xf0   :  { %v247_v34 = vadd.f32 %v246_v32, %v245_v31  ;;  %v300_v35 = vadd.f32 %v299_v33, %v298_v30 }
  0xf2   :  { %v249_v38 = vadd.f32 %v248_v37, %v247_v34  ;;  %v302_v39 = vadd.f32 %v301_v36, %v300_v35 }
  0xf4   :  { %v250_v41 = vrot.slane %v249_v38, 4  ;;  %v304_v42 = vadd.f32 %v303_v40, %v302_v39 }
  0xf6   :  { %v305_v43 = vrot.slane %v304_v42, 4  ;;  %v251_v44 = vadd.f32 %v250_v41, %v249_v38 }
  0xf8   :  { %v252_v46 = vrot.slane %v251_v44, 2  ;;  %v306_v47 = vadd.f32 %v305_v43, %v304_v42 }
  0xfa   :  { %v253_v45 = vadd.f32 %v252_v46, %v251_v44  ;;  %v307_v48 = vrot.slane %v306_v47, 2 }
  0xfc   :  { %v254_v49 = vrot.slane %v253_v45, 1  ;;  %v308_v50 = vadd.f32 %v307_v48, %v306_v47 }
  0xfe   :  { %v255_v51 = vadd.f32 %v254_v49, %v253_v45  ;;  %v309_v52 = vrot.slane %v308_v50, 1 }
 0x100   :  { %257 = vst.msk [vmem:[#allocation2] sm:$0x1] %vm256_vm3, %v255_v51  ;;  %v310_v53 = vadd.f32 %v309_v52, %v308_v50 }
 0x101   :  { %424 = shalt.err (!%p421_p4)
}
 0x102   :  { %321 = dma.vmem_to_hbm [thread:$0]  %s319_s6, 16, %s562_s2, [#allocation3]   ;;  %311 = vst.msk [vmem:[#allocation4] sm:$0x1] %vm256_vm3, %v310_v53 }
 0x103   :  { %s433_s13 = scalar_lea.vmem %s329_s8, 16  ;;  %s437_s14 = scalar_lea.vmem %s329_s8, 32 }
 0x104   :  { %p434_p5 = scmp.ne.s32.totalorder %s329_s8, %s433_s13  ;;  %p438_p6 = scmp.lt.s32.totalorder %s329_s8, %s329_s8 }
 0x105   :  { %p439_p7 = scmp.lt.s32.totalorder %s437_s14, %s433_s13 }
 0x107   :  { %p440_p8 = por %p439_p7, %p438_p6 }
 0x109   :  { %p441_p9 = pnand %p440_p8, %p434_p5 }
 0x10b   :  { %444 = shalt.err (!%p441_p9)
}
 0x10c   :  { %331 = dma.vmem_to_hbm [thread:$0]  %s329_s8, 16, %s563_s3, [#allocation5]  }
 0x10d   :  { %453 = dma.done.wait [#allocation3], 16  }
 0x10e   :  { %454 = vsyncadd [#allocation3], 4294967280 }
 0x10f   :  { %455 = dma.done.wait [#allocation5], 16  }
 0x110   :  { %456 = vsyncadd [#allocation5], 4294967280 }
 0x111   :  { %338 = vsyncpa [#allocation3], 1 }
 0x112   :  { %339 = vsyncpa [#allocation5], 1 }

</bundles_post_ra>
